<compile_context>
chip_gen: v7x
topology: tpu7x:2x2x1
jax: 0.10.0
libtpu: 0.0.40
codegen_flags: <defaults>
</compile_context>

<pallas_src>
import functools
import math

import jax
import jax.numpy as jnp
from jax import lax
from jax.experimental import pallas as pl
from jax.experimental.pallas import tpu as pltpu


def _round_up(x, n):
    return ((x + n - 1) // n) * n


# ----------------------------------------------------------------------------
# Glue: feature map + division grouping (plain JAX; cheap elementwise/reshape).
# TODO(synk): FeatureMap / group_divisions / RanksFactory /
#   KernelSharedTensorTrain sources are not in the reference; the canonical
#   cos/sin MPS local feature map and ranks = [1, R, R, 1] TT semantics are
#   reproduced here.
# ----------------------------------------------------------------------------
def feature_map_and_group(x, m):
    """x: (B, D) in [0,1]  ->  (T=D, B, m) featured, time-major."""
    c = jnp.cos(jnp.pi * x / 2.0)
    s = jnp.sin(jnp.pi * x / 2.0)
    feats = []
    for k in range(m):
        coeff = math.sqrt(math.comb(m - 1, k))
        feats.append(coeff * (c ** (m - 1 - k)) * (s ** k))
    phi = jnp.stack(feats, axis=-1)            # (B, D, m)
    return jnp.transpose(phi, (1, 0, 2))       # (D, B, m) == group_divisions


def _block_diag_stack(w):
    """w: (C, r_in, r_out) -> block-diagonal (C*r_in, C*r_out)."""
    C, ri, ro = w.shape
    eye = jnp.eye(C, dtype=w.dtype)
    return jnp.einsum('cd,cij->cidj', eye, w).reshape(C * ri, C * ro)


# ----------------------------------------------------------------------------
# Pallas kernel: one grid step per batch tile (parallel axis).
#   Carried state is k-replicated: state[b, k*r_tot + c*R + i] holds the
#   category-c TT state for every k block.  Each time step:
#       lhs   = phi_exp[t] * state          (full-vreg VPU multiply)
#       state = lhs @ wmid                  (one MXU push, replication preserved)
#   Epilogue: one matmul against the packed last cores + masked log_softmax
#   written once to a lane-dense 128-padded output tile.
# ----------------------------------------------------------------------------
def ttnet_kernel(phi_ref, s0_ref, wmid_ref, wl_ref, out_ref, *, num_valid):
    T, bt, w_pad = phi_ref.shape
    c_pad = out_ref.shape[1]

    wmid = wmid_ref[...]                                        # (w_pad, w_pad), hoisted
    state0 = jnp.broadcast_to(s0_ref[...], (bt, w_pad)).astype(jnp.float32)

    def step(t, state):
        lhs = phi_ref[t] * state                                # (bt, w_pad), full vregs
        return jnp.dot(lhs, wmid, preferred_element_type=jnp.float32)

    state = lax.fori_loop(0, T, step, state0, unroll=True)

    # last TT core (all-ones local input) for every category in one matmul;
    # wl rows outside the first k block are zero, so the replication is inert.
    logits = jnp.dot(state, wl_ref[...], preferred_element_type=jnp.float32)

    # masked log_softmax over the valid category lanes; padded lanes stay inert.
    col = lax.broadcasted_iota(jnp.int32, (bt, c_pad), 1)
    valid = col < num_valid
    z = jnp.where(valid, logits, jnp.float32(-1e30))
    zmax = jnp.max(z, axis=1, keepdims=True)
    zs = z - zmax
    ez = jnp.where(valid, jnp.exp(zs), jnp.float32(0.0))
    lse = jnp.log(jnp.sum(ez, axis=1, keepdims=True))
    out_ref[...] = zs - lse                                     # single lane-dense store


def _choose_batch_tile(B):
    b8 = _round_up(max(B, 1), 8)
    if b8 > 512:
        return 512
    if b8 > 256:
        # two tiles so the "parallel" axis can shard across v7x's 2 TensorCores
        return _round_up((b8 + 1) // 2, 8)
    return b8


@jax.jit
def ttnet_forward(x, wf, wm, wl):
    """x: (B, D); wf: (C, m, r0, R); wm: (C, m, R, R); wl: (C, m, R, r_last)."""
    B, _ = x.shape
    C, m, _, R = wf.shape
    r_last = wl.shape[3]
    r_tot = C * R                       # all per-category states packed along lanes
    W = m * r_tot                       # k-replicated state width
    w_pad = _round_up(W, 128)           # lane-dense everything
    c_out = C * r_last
    c_pad = _round_up(c_out, 128)

    phi = feature_map_and_group(x, m).astype(jnp.float32)       # (T, B, m)
    T = phi.shape[0]

    # --- batch tiling (parallel grid axis) ------------------------------------
    bt = _choose_batch_tile(B)
    b_pad = _round_up(max(B, 1), bt)

    # --- phi pre-expansion: phi[t,b,k] broadcast across the r_tot lanes of its
    #     k block (done once by XLA), zero-padded to lane-dense width ----------
    phi_exp = jnp.broadcast_to(phi[:, :, :, None], (T, B, m, r_tot)).reshape(T, B, W)
    phi_exp = jnp.pad(phi_exp, ((0, 0), (0, b_pad - B), (0, w_pad - W)))

    # --- packed weights (tiny; compiled once under jit) -----------------------
    # first core with all-ones input & state -> per-category initial state,
    # replicated into every k block
    s0 = jnp.sum(wf, axis=(1, 2)).reshape(1, r_tot).astype(jnp.float32)
    s0_rep = jnp.pad(jnp.tile(s0, (1, m)), ((0, 0), (0, w_pad - W)))

    # middle cores: block-diag over categories, stacked over k along rows,
    # replicated over k along columns so the matmul preserves k replication
    wmid2 = jnp.concatenate(
        [_block_diag_stack(wm[:, k]) for k in range(m)], axis=0
    ).astype(jnp.float32)                                       # (W, r_tot)
    wmid3 = jnp.pad(jnp.tile(wmid2, (1, m)),
                    ((0, w_pad - W), (0, w_pad - W)))           # (w_pad, w_pad)

    # last core with all-ones input: block-diag over categories; rows live in
    # the first k block only (other replicas are inert); lane-padded output
    wl_bd = _block_diag_stack(jnp.sum(wl, axis=1)).astype(jnp.float32)   # (r_tot, c_out)
    wl_full = jnp.pad(wl_bd, ((0, w_pad - r_tot), (0, c_pad - c_out)))

    kernel = functools.partial(ttnet_kernel, num_valid=c_out)

    out = pl.pallas_call(
        kernel,
        out_shape=jax.ShapeDtypeStruct((b_pad, c_pad), jnp.float32),
        grid_spec=pltpu.PrefetchScalarGridSpec(
            num_scalar_prefetch=0,
            grid=(b_pad // bt,),
            in_specs=[
                pl.BlockSpec((T, bt, w_pad), lambda b: (0, b, 0)),   # expanded phi tile
                pl.BlockSpec((1, w_pad), lambda b: (0, 0)),          # replicated s0
                pl.BlockSpec((w_pad, w_pad), lambda b: (0, 0)),      # packed middle cores
                pl.BlockSpec((w_pad, c_pad), lambda b: (0, 0)),      # packed last cores
            ],
            out_specs=pl.BlockSpec((bt, c_pad), lambda b: (b, 0)),
        ),
        compiler_params=pltpu.CompilerParams(
            dimension_semantics=("parallel",)),
    )(phi_exp, s0_rep, wmid3, wl_full)

    return out[:B, :c_out]


# ----------------------------------------------------------------------------
# Pure-JAX reference (mirrors the PyTorch forward) for a correctness check.
# ----------------------------------------------------------------------------
def reference_forward(x, wf, wm, wl):
    phi = feature_map_and_group(x, wf.shape[1])
    B = x.shape[0]
    C, m, r0, R = wf.shape
    T = phi.shape[0]
    hi = lax.Precision.HIGHEST
    outs = []
    for c in range(C):
        state = jnp.ones((B, r0), jnp.float32)
        inp = jnp.ones((B, m), jnp.float32)
        state = jnp.einsum('bi,bk,kij->bj', state, inp, wf[c], precision=hi)
        for t in range(T):
            state = jnp.einsum('bi,bk,kij->bj', state, phi[t], wm[c], precision=hi)
        state = jnp.einsum('bi,bk,kij->bj', state, jnp.ones((B, m)), wl[c],
                           precision=hi)
        outs.append(state)
    logits = jnp.concatenate(outs, axis=1)
    return jax.nn.log_softmax(logits, axis=1)


if __name__ == "__main__":
    # Small, forward-consistent sizes
    B = 2            # batch_size
    D = 8            # amount_of_divisions  (= recurrent time steps)
    m = 2            # local feature dimension
    R = 8            # shared TT rank: ranks = [1, R, R, 1]
    r0 = 1           # ranks[FIRST]
    r_last = 1       # ranks[LAST]
    C = 4            # categories
    init_value = 0.2

    key = jax.random.PRNGKey(0)
    kx, k1, k2, k3 = jax.random.split(key, 4)
    x = jax.random.uniform(kx, (B, D), jnp.float32)                       # inputs in [0, 1]
    wf = init_value * jax.random.normal(k1, (C, m, r0, R), jnp.float32)   # first kernels
    wm = init_value * jax.random.normal(k2, (C, m, R, R), jnp.float32)    # middle kernels
    wl = init_value * jax.random.normal(k3, (C, m, R, r_last), jnp.float32)  # last kernels

    out = jax.block_until_ready(ttnet_forward(x, wf, wm, wl))
    ref = reference_forward(x, wf, wm, wl)

    assert out.shape == (B, C * r_last), out.shape
    assert bool(jnp.all(jnp.isfinite(out)))
    assert bool(jnp.allclose(out, ref, atol=1e-3, rtol=1e-3)), (out, ref)
    print("KERNEL_OK")
</pallas_src>

<mosaic_0001>
module attributes {stable_mosaic.version = 11 : i64} {
  func.func @ttnet_kernel(%arg0: i32, %arg1: memref<8x8x128xf32, #tpu.memory_space<vmem>>, %arg2: memref<1x128xf32, #tpu.memory_space<vmem>>, %arg3: memref<128x128xf32, #tpu.memory_space<vmem>>, %arg4: memref<128x128xf32, #tpu.memory_space<vmem>>, %arg5: memref<8x128xf32, #tpu.memory_space<vmem>>) attributes {dimension_semantics = [#tpu.dimension_semantics<parallel>], iteration_bounds = array<i64: 1>, scalar_prefetch = 0 : i64, scratch_operands = 0 : i64, tpu.core_type = #tpu.core_type<tc>, window_params = [{transform_indices = @transform_0, window_bounds = array<i64: 8, 8, 128>}, {pipeline_mode = #tpu.pipeline_mode<synchronous>, transform_indices = @transform_1, window_bounds = array<i64: 1, 128>}, {pipeline_mode = #tpu.pipeline_mode<synchronous>, transform_indices = @transform_2, window_bounds = array<i64: 128, 128>}, {pipeline_mode = #tpu.pipeline_mode<synchronous>, transform_indices = @transform_3, window_bounds = array<i64: 128, 128>}, {transform_indices = @transform_4, window_bounds = array<i64: 8, 128>}]} {
    %c0 = arith.constant 0 : index
    %c0_0 = arith.constant 0 : index
    %0 = vector.load %arg3[%c0, %c0_0] : memref<128x128xf32, #tpu.memory_space<vmem>>, vector<128x128xf32>
    %c0_1 = arith.constant 0 : index
    %c0_2 = arith.constant 0 : index
    %1 = vector.load %arg2[%c0_1, %c0_2] : memref<1x128xf32, #tpu.memory_space<vmem>>, vector<1x128xf32>
    %2 = vector.shape_cast %1 : vector<1x128xf32> to vector<1x128xf32>
    %3 = vector.broadcast %2 : vector<1x128xf32> to vector<8x128xf32>
    %c0_i32 = arith.constant 0 : i32
    %4 = arith.index_cast %c0_i32 : i32 to index
    %c0_3 = arith.constant 0 : index
    %c0_4 = arith.constant 0 : index
    %5 = vector.load %arg1[%4, %c0_3, %c0_4] : memref<8x8x128xf32, #tpu.memory_space<vmem>>, vector<1x8x128xf32>
    %6 = vector.shape_cast %5 : vector<1x8x128xf32> to vector<8x128xf32>
    %7 = arith.mulf %6, %3 : vector<8x128xf32>
    %cst = arith.constant dense<0.000000e+00> : vector<8x128xf32>
    %8 = tpu.matmul %7, %0, %cst {dimension_numbers = #tpu.dot_dimension_numbers<[1], [0], [0], [1], [0, 0, 1, 1], [], []>} : vector<8x128xf32>, vector<128x128xf32>, vector<8x128xf32> -> vector<8x128xf32>
    %c1_i32 = arith.constant 1 : i32
    %9 = arith.index_cast %c1_i32 : i32 to index
    %c0_5 = arith.constant 0 : index
    %c0_6 = arith.constant 0 : index
    %10 = vector.load %arg1[%9, %c0_5, %c0_6] : memref<8x8x128xf32, #tpu.memory_space<vmem>>, vector<1x8x128xf32>
    %11 = vector.shape_cast %10 : vector<1x8x128xf32> to vector<8x128xf32>
    %12 = arith.mulf %11, %8 : vector<8x128xf32>
    %cst_7 = arith.constant dense<0.000000e+00> : vector<8x128xf32>
    %13 = tpu.matmul %12, %0, %cst_7 {dimension_numbers = #tpu.dot_dimension_numbers<[1], [0], [0], [1], [0, 0, 1, 1], [], []>} : vector<8x128xf32>, vector<128x128xf32>, vector<8x128xf32> -> vector<8x128xf32>
    %c2_i32 = arith.constant 2 : i32
    %14 = arith.index_cast %c2_i32 : i32 to index
    %c0_8 = arith.constant 0 : index
    %c0_9 = arith.constant 0 : index
    %15 = vector.load %arg1[%14, %c0_8, %c0_9] : memref<8x8x128xf32, #tpu.memory_space<vmem>>, vector<1x8x128xf32>
    %16 = vector.shape_cast %15 : vector<1x8x128xf32> to vector<8x128xf32>
    %17 = arith.mulf %16, %13 : vector<8x128xf32>
    %cst_10 = arith.constant dense<0.000000e+00> : vector<8x128xf32>
    %18 = tpu.matmul %17, %0, %cst_10 {dimension_numbers = #tpu.dot_dimension_numbers<[1], [0], [0], [1], [0, 0, 1, 1], [], []>} : vector<8x128xf32>, vector<128x128xf32>, vector<8x128xf32> -> vector<8x128xf32>
    %c3_i32 = arith.constant 3 : i32
    %19 = arith.index_cast %c3_i32 : i32 to index
    %c0_11 = arith.constant 0 : index
    %c0_12 = arith.constant 0 : index
    %20 = vector.load %arg1[%19, %c0_11, %c0_12] : memref<8x8x128xf32, #tpu.memory_space<vmem>>, vector<1x8x128xf32>
    %21 = vector.shape_cast %20 : vector<1x8x128xf32> to vector<8x128xf32>
    %22 = arith.mulf %21, %18 : vector<8x128xf32>
    %cst_13 = arith.constant dense<0.000000e+00> : vector<8x128xf32>
    %23 = tpu.matmul %22, %0, %cst_13 {dimension_numbers = #tpu.dot_dimension_numbers<[1], [0], [0], [1], [0, 0, 1, 1], [], []>} : vector<8x128xf32>, vector<128x128xf32>, vector<8x128xf32> -> vector<8x128xf32>
    %c4_i32 = arith.constant 4 : i32
    %24 = arith.index_cast %c4_i32 : i32 to index
    %c0_14 = arith.constant 0 : index
    %c0_15 = arith.constant 0 : index
    %25 = vector.load %arg1[%24, %c0_14, %c0_15] : memref<8x8x128xf32, #tpu.memory_space<vmem>>, vector<1x8x128xf32>
    %26 = vector.shape_cast %25 : vector<1x8x128xf32> to vector<8x128xf32>
    %27 = arith.mulf %26, %23 : vector<8x128xf32>
    %cst_16 = arith.constant dense<0.000000e+00> : vector<8x128xf32>
    %28 = tpu.matmul %27, %0, %cst_16 {dimension_numbers = #tpu.dot_dimension_numbers<[1], [0], [0], [1], [0, 0, 1, 1], [], []>} : vector<8x128xf32>, vector<128x128xf32>, vector<8x128xf32> -> vector<8x128xf32>
    %c5_i32 = arith.constant 5 : i32
    %29 = arith.index_cast %c5_i32 : i32 to index
    %c0_17 = arith.constant 0 : index
    %c0_18 = arith.constant 0 : index
    %30 = vector.load %arg1[%29, %c0_17, %c0_18] : memref<8x8x128xf32, #tpu.memory_space<vmem>>, vector<1x8x128xf32>
    %31 = vector.shape_cast %30 : vector<1x8x128xf32> to vector<8x128xf32>
    %32 = arith.mulf %31, %28 : vector<8x128xf32>
    %cst_19 = arith.constant dense<0.000000e+00> : vector<8x128xf32>
    %33 = tpu.matmul %32, %0, %cst_19 {dimension_numbers = #tpu.dot_dimension_numbers<[1], [0], [0], [1], [0, 0, 1, 1], [], []>} : vector<8x128xf32>, vector<128x128xf32>, vector<8x128xf32> -> vector<8x128xf32>
    %c6_i32 = arith.constant 6 : i32
    %34 = arith.index_cast %c6_i32 : i32 to index
    %c0_20 = arith.constant 0 : index
    %c0_21 = arith.constant 0 : index
    %35 = vector.load %arg1[%34, %c0_20, %c0_21] : memref<8x8x128xf32, #tpu.memory_space<vmem>>, vector<1x8x128xf32>
    %36 = vector.shape_cast %35 : vector<1x8x128xf32> to vector<8x128xf32>
    %37 = arith.mulf %36, %33 : vector<8x128xf32>
    %cst_22 = arith.constant dense<0.000000e+00> : vector<8x128xf32>
    %38 = tpu.matmul %37, %0, %cst_22 {dimension_numbers = #tpu.dot_dimension_numbers<[1], [0], [0], [1], [0, 0, 1, 1], [], []>} : vector<8x128xf32>, vector<128x128xf32>, vector<8x128xf32> -> vector<8x128xf32>
    %c7_i32 = arith.constant 7 : i32
    %39 = arith.index_cast %c7_i32 : i32 to index
    %c0_23 = arith.constant 0 : index
    %c0_24 = arith.constant 0 : index
    %40 = vector.load %arg1[%39, %c0_23, %c0_24] : memref<8x8x128xf32, #tpu.memory_space<vmem>>, vector<1x8x128xf32>
    %41 = vector.shape_cast %40 : vector<1x8x128xf32> to vector<8x128xf32>
    %42 = arith.mulf %41, %38 : vector<8x128xf32>
    %cst_25 = arith.constant dense<0.000000e+00> : vector<8x128xf32>
    %43 = tpu.matmul %42, %0, %cst_25 {dimension_numbers = #tpu.dot_dimension_numbers<[1], [0], [0], [1], [0, 0, 1, 1], [], []>} : vector<8x128xf32>, vector<128x128xf32>, vector<8x128xf32> -> vector<8x128xf32>
    %c8_i32 = arith.constant 8 : i32
    %c0_26 = arith.constant 0 : index
    %c0_27 = arith.constant 0 : index
    %44 = vector.load %arg4[%c0_26, %c0_27] : memref<128x128xf32, #tpu.memory_space<vmem>>, vector<128x128xf32>
    %cst_28 = arith.constant dense<0.000000e+00> : vector<8x128xf32>
    %45 = tpu.matmul %43, %44, %cst_28 {dimension_numbers = #tpu.dot_dimension_numbers<[1], [0], [0], [1], [0, 0, 1, 1], [], []>} : vector<8x128xf32>, vector<128x128xf32>, vector<8x128xf32> -> vector<8x128xf32>
    %46 = tpu.iota {dimensions = array<i32: 1>} : vector<8x128xi32>
    %c4_i32_29 = arith.constant 4 : i32
    %47 = vector.broadcast %c4_i32_29 : i32 to vector<8x128xi32>
    %48 = arith.cmpi slt, %46, %47 : vector<8x128xi32>
    %cst_30 = arith.constant -1.000000e+30 : f32
    %49 = vector.broadcast %cst_30 : f32 to vector<8x128xf32>
    %50 = arith.select %48, %45, %49 : vector<8x128xi1>, vector<8x128xf32>
    %cst_31 = arith.constant dense<0xFF800000> : vector<8xf32>
    %51 = vector.multi_reduction <maximumf>, %50, %cst_31 [1] : vector<8x128xf32> to vector<8xf32>
    %52 = vector.shape_cast %51 : vector<8xf32> to vector<8x1xf32>
    %53 = vector.broadcast %52 : vector<8x1xf32> to vector<8x128xf32>
    %54 = arith.subf %50, %53 : vector<8x128xf32>
    %55 = math.exp %54 : vector<8x128xf32>
    %cst_32 = arith.constant 0.000000e+00 : f32
    %56 = vector.broadcast %cst_32 : f32 to vector<8x128xf32>
    %57 = arith.select %48, %55, %56 : vector<8x128xi1>, vector<8x128xf32>
    %cst_33 = arith.constant dense<0.000000e+00> : vector<8xf32>
    %58 = vector.multi_reduction <add>, %57, %cst_33 [1] : vector<8x128xf32> to vector<8xf32>
    %59 = vector.shape_cast %58 : vector<8xf32> to vector<8x1xf32>
    %60 = math.log %59 : vector<8x1xf32>
    %61 = vector.broadcast %60 : vector<8x1xf32> to vector<8x128xf32>
    %62 = arith.subf %54, %61 : vector<8x128xf32>
    %c0_34 = arith.constant 0 : index
    %c0_35 = arith.constant 0 : index
    %63 = vector.load %arg5[%c0_34, %c0_35] : memref<8x128xf32, #tpu.memory_space<vmem>>, vector<8x128xf32>
    tpu.vector_store %arg5[%c0_34, %c0_35], %62 {strides = array<i32>} : memref<8x128xf32, #tpu.memory_space<vmem>>, vector<8x128xf32>,
    return
  }
  func.func @transform_0(%arg0: i32) -> (i32, i32, i32) {
    %c0_i32 = arith.constant 0 : i32
    %c0_i32_0 = arith.constant 0 : i32
    %c0_i32_1 = arith.constant 0 : i32
    return %c0_i32, %arg0, %c0_i32_0 : i32, i32, i32
  }
  func.func @transform_1(%arg0: i32) -> (i32, i32) {
    %c0_i32 = arith.constant 0 : i32
    %c0_i32_0 = arith.constant 0 : i32
    %c0_i32_1 = arith.constant 0 : i32
    return %c0_i32, %c0_i32_0 : i32, i32
  }
  func.func @transform_2(%arg0: i32) -> (i32, i32) {
    %c0_i32 = arith.constant 0 : i32
    %c0_i32_0 = arith.constant 0 : i32
    %c0_i32_1 = arith.constant 0 : i32
    return %c0_i32, %c0_i32_0 : i32, i32
  }
  func.func @transform_3(%arg0: i32) -> (i32, i32) {
    %c0_i32 = arith.constant 0 : i32
    %c0_i32_0 = arith.constant 0 : i32
    %c0_i32_1 = arith.constant 0 : i32
    return %c0_i32, %c0_i32_0 : i32, i32
  }
  func.func @transform_4(%arg0: i32) -> (i32, i32) {
    %c0_i32 = arith.constant 0 : i32
    %c0_i32_0 = arith.constant 0 : i32
    return %arg0, %c0_i32 : i32, i32
  }
}

</mosaic_0001>

<bundles_post_ra>
// kernel: ttnet_forward.1
= control target key start
LH: loop header
LB: loop body
LE: loop exit
PB: predicated region body
PF: predicated region fallthrough
CT: control target
= control target key end

     0   :  { %v1428_v0 = vmov 0.0|0.0   ;;  %vm1429_vm0 = vmmov 0   ;;  %v1430_v4 = vmov 0.0   ;;  %s1752_s2 = inlined_call_operand.vmem [shape: f32[128,128], index: 2, kind: input, shape index: {}]   ;;  %s1753_s0 = inlined_call_operand.vmem [shape: f32[8,8,128], index: 0, kind: input, shape index: {}]   ;;  %s1754_s1 = inlined_call_operand.vmem [shape: f32[1,128], index: 1, kind: input, shape index: {}]   ;;  %s1755_s3 = inlined_call_operand.vmem [shape: f32[128,128], index: 3, kind: input, shape index: {}]   ;;  %s1756_s4 = inlined_call_operand.vmem [shape: f32[8,128], index: 4, kind: output, shape index: {}]  }
   0x1   :  { %1205 = vmatprep.subr.bf16.mxu0 %v1428_v0  ;;  %v17_v1 = vld [vmem:[%s1752_s2] sm:$0xff]  ;;  %v18_v2 = vld [vmem:[%s1752_s2 + $0x8] sm:$0xff]  ;;  %v19_v3 = vld [vmem:[%s1752_s2 + $0x10] sm:$0xff]  ;;  %922 = vmatprep.mubr.msk.f32.mxu0 %vm1429_vm0, %v1430_v4 }
   0x2   :  { %v1468_v5 = vpack.c.bf16 %v18_v2, %v17_v1  ;;  %v20_v6 = vld [vmem:[%s1752_s2 + $0x18] sm:$0xff]  ;;  %1229 = vmatprep.subr.bf16.mxu1 %v1428_v0  ;;  %957 = vmatprep.mubr.msk.f32.mxu1 %vm1429_vm0, %v1430_v4  ;;  %v21_v8 = vld [vmem:[%s1752_s2 + $0x20] sm:$0xff]  ;;  %v22_v9 = vld [vmem:[%s1752_s2 + $0x28] sm:$0xff] }
   0x3   :  { %v1477_v7 = vpack.c.bf16 %v20_v6, %v19_v3  ;;  %v1489_v10 = vpack.c.bf16 %v22_v9, %v21_v8  ;;  %v23_v11 = vld [vmem:[%s1752_s2 + $0x30] sm:$0xff]  ;;  %v24_v12 = vld [vmem:[%s1752_s2 + $0x38] sm:$0xff]  ;;  %v25_v14 = vld [vmem:[%s1752_s2 + $0x40] sm:$0xff] }
   0x4   :  { %1207 = vmatpush3.bf16.msra.mxu0 %v1468_v5  ;;  %1231 = vmatpush3.bf16.msra.mxu1 %v1468_v5  ;;  %v1501_v13 = vpack.c.bf16 %v24_v12, %v23_v11  ;;  %v26_v15 = vld [vmem:[%s1752_s2 + $0x48] sm:$0xff]  ;;  %v27_v17 = vld [vmem:[%s1752_s2 + $0x50] sm:$0xff]  ;;  %v28_v18 = vld [vmem:[%s1752_s2 + $0x58] sm:$0xff] }
   0x5   :  { %1208 = vmatprep.subr.bf16.mxu0 %v1428_v0  ;;  %1232 = vmatprep.subr.bf16.mxu1 %v1428_v0  ;;  %v1513_v16 = vpack.c.bf16 %v26_v15, %v25_v14  ;;  %v1525_v19 = vpack.c.bf16 %v28_v18, %v27_v17  ;;  %v29_v20 = vld [vmem:[%s1752_s2 + $0x60] sm:$0xff]  ;;  %v30_v21 = vld [vmem:[%s1752_s2 + $0x68] sm:$0xff]  ;;  %v31_v23 = vld [vmem:[%s1752_s2 + $0x70] sm:$0xff] }
   0x6   :  { %v1537_v22 = vpack.c.bf16 %v30_v21, %v29_v20  ;;  %v32_v24 = vld [vmem:[%s1752_s2 + $0x78] sm:$0xff]  ;;  %v729_v26 = vld [vmem:[%s1754_s1] ss:$0 sm:$0xff]  ;;  %v730_v29 = vld [vmem:[%s1753_s0 + $0x8] sm:$0xff]  ;;  %v709_v20 = vlaneseq }
   0x7   :  { %v1549_v25 = vpack.c.bf16 %v32_v24, %v31_v23  ;;  %v40_v27 = vld [vmem:[%s1753_s0] sm:$0xff]  ;;  %v731_v33 = vld [vmem:[%s1753_s0 + $0x10] sm:$0xff]  ;;  %v732_v37 = vld [vmem:[%s1753_s0 + $0x18] sm:$0xff] }
   0x8   :  { %1210 = vmatpush3.bf16.msra.mxu0 %v1477_v7  ;;  %1234 = vmatpush3.bf16.msra.mxu1 %v1477_v7  ;;  %v41_v28 = vmul.f32 %v729_v26, %v40_v27  ;;  %v733_v41 = vld [vmem:[%s1753_s0 + $0x20] sm:$0xff]  ;;  %v734_v45 = vld [vmem:[%s1753_s0 + $0x28] sm:$0xff]  ;;  %v735_v49 = vld [vmem:[%s1753_s0 + $0x30] sm:$0xff]  ;;  %v710_v21 = vand.u32 127, %v709_v20 }
   0x9   :  { %1211 = vmatprep.subr.bf16.mxu0 %v1428_v0  ;;  %1235 = vmatprep.subr.bf16.mxu1 %v1428_v0  ;;  %v623_v53 = vld [vmem:[%s1755_s3] sm:$0xff]  ;;  %v624_v54 = vld [vmem:[%s1755_s3 + $0x8] sm:$0xff]  ;;  %v625_v55 = vld [vmem:[%s1755_s3 + $0x10] sm:$0xff] }
   0xa   :  { %v1398_v56 = vpack.c.bf16 %v624_v54, %v623_v53  ;;  %v626_v57 = vld [vmem:[%s1755_s3 + $0x18] sm:$0xff]  ;;  %v627_v59 = vld [vmem:[%s1755_s3 + $0x20] sm:$0xff]  ;;  %v628_v60 = vld [vmem:[%s1755_s3 + $0x28] sm:$0xff]  ;;  %vm711_vm1 = vcmp.lt.s32.totalorder %v710_v21, 4 }
   0xb   :  { %v1401_v58 = vpack.c.bf16 %v626_v57, %v625_v55  ;;  %v1404_v61 = vpack.c.bf16 %v628_v60, %v627_v59  ;;  %v629_v62 = vld [vmem:[%s1755_s3 + $0x30] sm:$0xff]  ;;  %v630_v63 = vld [vmem:[%s1755_s3 + $0x38] sm:$0xff]  ;;  %v631_v2 = vld [vmem:[%s1755_s3 + $0x40] sm:$0xff] }
   0xc   :  { %1213 = vmatpush3.bf16.msra.mxu0 %v1489_v10  ;;  %1237 = vmatpush3.bf16.msra.mxu1 %v1489_v10  ;;  %v1407_v1 = vpack.c.bf16 %v630_v63, %v629_v62  ;;  %v632_v3 = vld [vmem:[%s1755_s3 + $0x48] sm:$0xff]  ;;  %v634_v6 = vld [vmem:[%s1755_s3 + $0x58] sm:$0xff]  ;;  %v635_v8 = vld [vmem:[%s1755_s3 + $0x60] sm:$0xff] }
   0xd   :  { %1214 = vmatprep.subr.bf16.mxu0 %v1428_v0  ;;  %1238 = vmatprep.subr.bf16.mxu1 %v1428_v0  ;;  %v636_v9 = vld [vmem:[%s1755_s3 + $0x68] sm:$0xff]  ;;  %v637_v11 = vld [vmem:[%s1755_s3 + $0x70] sm:$0xff]  ;;  %v638_v12 = vld [vmem:[%s1755_s3 + $0x78] sm:$0xff] }
   0xe   :  { %v736_v14 = vld [vmem:[%s1753_s0 + $0x38] sm:$0xff] }
  0x10   :  { %1216 = vmatpush3.bf16.msra.mxu0 %v1501_v13  ;;  %1240 = vmatpush3.bf16.msra.mxu1 %v1501_v13 }
  0x11   :  { %1217 = vmatprep.subr.bf16.mxu0 %v1428_v0  ;;  %1241 = vmatprep.subr.bf16.mxu1 %v1428_v0 }
  0x14   :  { %1219 = vmatpush3.bf16.msra.mxu0 %v1513_v16  ;;  %1243 = vmatpush3.bf16.msra.mxu1 %v1513_v16 }
  0x15   :  { %1220 = vmatprep.subr.bf16.mxu0 %v1428_v0  ;;  %1244 = vmatprep.subr.bf16.mxu1 %v1428_v0 }
  0x18   :  { %1222 = vmatpush3.bf16.msra.mxu0 %v1525_v19  ;;  %1246 = vmatpush3.bf16.msra.mxu1 %v1525_v19 }
  0x19   :  { %1223 = vmatprep.subr.bf16.mxu0 %v1428_v0  ;;  %1247 = vmatprep.subr.bf16.mxu1 %v1428_v0 }
  0x1c   :  { %1225 = vmatpush3.bf16.msra.mxu0 %v1537_v22  ;;  %1249 = vmatpush3.bf16.msra.mxu1 %v1537_v22 }
  0x1d   :  { %1226 = vmatprep.subr.bf16.mxu0 %v1428_v0  ;;  %1250 = vmatprep.subr.bf16.mxu1 %v1428_v0 }
  0x20   :  { %1228 = vmatpush3.bf16.msra.mxu0 %v1549_v25  ;;  %1252 = vmatpush3.bf16.msra.mxu1 %v1549_v25 }
  0x21   :  { %1253 = vmatprep.subr.bf16.mxu0 %v1428_v0  ;;  %1277 = vmatprep.subr.bf16.mxu1 %v1428_v0 }
  0x23   :  { %923 = vmatmul.mubr.f32.vlgmr.msra.gmra.mrb[0].mxu0 %v41_v28 }
  0x24   :  { %1255 = vmatpush3.bf16.msra.mxu0 %v1468_v5  ;;  %992 = vmatprep.mubr.msk.f32.mxu0 %vm1429_vm0, %v1430_v4 }
  0x25   :  { %1256 = vmatprep.subr.bf16.mxu0 %v1428_v0 }
  0x28   :  { %1258 = vmatpush3.bf16.msra.mxu0 %v1477_v7 }
  0x29   :  { %1259 = vmatprep.subr.bf16.mxu0 %v1428_v0 }
  0x2c   :  { %1261 = vmatpush3.bf16.msra.mxu0 %v1489_v10 }
  0x2d   :  { %1262 = vmatprep.subr.bf16.mxu0 %v1428_v0 }
  0x30   :  { %1264 = vmatpush3.bf16.msra.mxu0 %v1501_v13 }
  0x31   :  { %1265 = vmatprep.subr.bf16.mxu0 %v1428_v0 }
  0x34   :  { %1267 = vmatpush3.bf16.msra.mxu0 %v1513_v16 }
  0x35   :  { %1268 = vmatprep.subr.bf16.mxu0 %v1428_v0 }
  0x38   :  { %1270 = vmatpush3.bf16.msra.mxu0 %v1525_v19 }
  0x39   :  { %1271 = vmatprep.subr.bf16.mxu0 %v1428_v0 }
  0x3c   :  { %1273 = vmatpush3.bf16.msra.mxu0 %v1537_v22 }
  0x3d   :  { %1274 = vmatprep.subr.bf16.mxu0 %v1428_v0 }
  0x40   :  { %1276 = vmatpush3.bf16.msra.mxu0 %v1549_v25 }
  0x41   :  { %1301 = vmatprep.subr.bf16.mxu0 %v1428_v0 }
  0xf6   :  { %v108_v30 = vpop.f32.mrb[0].mxu0 }
  0xf7   :  { %v114_v31 = vmul.f32 %v730_v29, %v108_v30  ;;  %v924_v32 = vpop.f32.mrb[1].mxu0 }
  0xf9   :  { %958 = vmatmul.mubr.f32.vlgmr.msra.gmra.mrb[0].mxu1 %v114_v31 }
  0xfa   :  { %1279 = vmatpush3.bf16.msra.mxu1 %v1468_v5  ;;  %1027 = vmatprep.mubr.msk.f32.mxu1 %vm1429_vm0, %v1430_v4 }
  0xfb   :  { %1280 = vmatprep.subr.bf16.mxu1 %v1428_v0 }
  0xfe   :  { %1282 = vmatpush3.bf16.msra.mxu1 %v1477_v7 }
  0xff   :  { %1283 = vmatprep.subr.bf16.mxu1 %v1428_v0 }
 0x102   :  { %1285 = vmatpush3.bf16.msra.mxu1 %v1489_v10 }
 0x103   :  { %1286 = vmatprep.subr.bf16.mxu1 %v1428_v0 }
 0x106   :  { %1288 = vmatpush3.bf16.msra.mxu1 %v1501_v13 }
 0x107   :  { %1289 = vmatprep.subr.bf16.mxu1 %v1428_v0 }
 0x10a   :  { %1291 = vmatpush3.bf16.msra.mxu1 %v1513_v16 }
 0x10b   :  { %1292 = vmatprep.subr.bf16.mxu1 %v1428_v0 }
 0x10e   :  { %1294 = vmatpush3.bf16.msra.mxu1 %v1525_v19 }
 0x10f   :  { %1295 = vmatprep.subr.bf16.mxu1 %v1428_v0 }
 0x112   :  { %1297 = vmatpush3.bf16.msra.mxu1 %v1537_v22 }
 0x113   :  { %1298 = vmatprep.subr.bf16.mxu1 %v1428_v0 }
 0x116   :  { %1300 = vmatpush3.bf16.msra.mxu1 %v1549_v25 }
 0x117   :  { %1325 = vmatprep.subr.bf16.mxu1 %v1428_v0 }
 0x1cc   :  { %v181_v34 = vpop.f32.mrb[0].mxu1 }
 0x1cd   :  { %v187_v35 = vmul.f32 %v731_v33, %v181_v34  ;;  %v959_v36 = vpop.f32.mrb[1].mxu1 }
 0x1cf   :  { %993 = vmatmul.mubr.f32.vlgmr.msra.gmra.mrb[2].mxu0 %v187_v35 }
 0x1d0   :  { %1303 = vmatpush3.bf16.msra.mxu0 %v1468_v5  ;;  %1062 = vmatprep.mubr.msk.f32.mxu0 %vm1429_vm0, %v1430_v4 }
 0x1d1   :  { %1304 = vmatprep.subr.bf16.mxu0 %v1428_v0 }
 0x1d4   :  { %1306 = vmatpush3.bf16.msra.mxu0 %v1477_v7 }
 0x1d5   :  { %1307 = vmatprep.subr.bf16.mxu0 %v1428_v0 }
 0x1d8   :  { %1309 = vmatpush3.bf16.msra.mxu0 %v1489_v10 }
 0x1d9   :  { %1310 = vmatprep.subr.bf16.mxu0 %v1428_v0 }
 0x1dc   :  { %1312 = vmatpush3.bf16.msra.mxu0 %v1501_v13 }
 0x1dd   :  { %1313 = vmatprep.subr.bf16.mxu0 %v1428_v0 }
 0x1e0   :  { %1315 = vmatpush3.bf16.msra.mxu0 %v1513_v16 }
 0x1e1   :  { %1316 = vmatprep.subr.bf16.mxu0 %v1428_v0 }
 0x1e4   :  { %1318 = vmatpush3.bf16.msra.mxu0 %v1525_v19 }
 0x1e5   :  { %1319 = vmatprep.subr.bf16.mxu0 %v1428_v0 }
 0x1e8   :  { %1321 = vmatpush3.bf16.msra.mxu0 %v1537_v22 }
 0x1e9   :  { %1322 = vmatprep.subr.bf16.mxu0 %v1428_v0 }
 0x1ec   :  { %1324 = vmatpush3.bf16.msra.mxu0 %v1549_v25 }
 0x1ed   :  { %1349 = vmatprep.subr.bf16.mxu0 %v1428_v0 }
 0x2a2   :  { %v254_v38 = vpop.f32.mrb[2].mxu0 }
 0x2a3   :  { %v260_v39 = vmul.f32 %v732_v37, %v254_v38  ;;  %v994_v40 = vpop.f32.mrb[3].mxu0 }
 0x2a5   :  { %1028 = vmatmul.mubr.f32.vlgmr.msra.gmra.mrb[2].mxu1 %v260_v39 }
 0x2a6   :  { %1327 = vmatpush3.bf16.msra.mxu1 %v1468_v5  ;;  %1097 = vmatprep.mubr.msk.f32.mxu1 %vm1429_vm0, %v1430_v4 }
 0x2a7   :  { %1328 = vmatprep.subr.bf16.mxu1 %v1428_v0 }
 0x2aa   :  { %1330 = vmatpush3.bf16.msra.mxu1 %v1477_v7 }
 0x2ab   :  { %1331 = vmatprep.subr.bf16.mxu1 %v1428_v0 }
 0x2ae   :  { %1333 = vmatpush3.bf16.msra.mxu1 %v1489_v10 }
 0x2af   :  { %1334 = vmatprep.subr.bf16.mxu1 %v1428_v0 }
 0x2b2   :  { %1336 = vmatpush3.bf16.msra.mxu1 %v1501_v13 }
 0x2b3   :  { %1337 = vmatprep.subr.bf16.mxu1 %v1428_v0 }
 0x2b6   :  { %1339 = vmatpush3.bf16.msra.mxu1 %v1513_v16 }
 0x2b7   :  { %1340 = vmatprep.subr.bf16.mxu1 %v1428_v0 }
 0x2ba   :  { %1342 = vmatpush3.bf16.msra.mxu1 %v1525_v19 }
 0x2bb   :  { %1343 = vmatprep.subr.bf16.mxu1 %v1428_v0 }
 0x2be   :  { %1345 = vmatpush3.bf16.msra.mxu1 %v1537_v22 }
 0x2bf   :  { %1346 = vmatprep.subr.bf16.mxu1 %v1428_v0 }
 0x2c2   :  { %1348 = vmatpush3.bf16.msra.mxu1 %v1549_v25 }
 0x2c3   :  { %1373 = vmatprep.subr.bf16.mxu1 %v1428_v0 }
 0x378   :  { %v327_v42 = vpop.f32.mrb[2].mxu1 }
 0x379   :  { %v333_v43 = vmul.f32 %v733_v41, %v327_v42  ;;  %v1029_v44 = vpop.f32.mrb[3].mxu1 }
 0x37b   :  { %1063 = vmatmul.mubr.f32.vlgmr.msra.gmra.mrb[4].mxu0 %v333_v43 }
 0x37c   :  { %1351 = vmatpush3.bf16.msra.mxu0 %v1468_v5  ;;  %1132 = vmatprep.mubr.msk.f32.mxu0 %vm1429_vm0, %v1430_v4 }
 0x37d   :  { %1352 = vmatprep.subr.bf16.mxu0 %v1428_v0 }
 0x380   :  { %1354 = vmatpush3.bf16.msra.mxu0 %v1477_v7 }
 0x381   :  { %1355 = vmatprep.subr.bf16.mxu0 %v1428_v0 }
 0x384   :  { %1357 = vmatpush3.bf16.msra.mxu0 %v1489_v10 }
 0x385   :  { %1358 = vmatprep.subr.bf16.mxu0 %v1428_v0 }
 0x388   :  { %1360 = vmatpush3.bf16.msra.mxu0 %v1501_v13 }
 0x389   :  { %1361 = vmatprep.subr.bf16.mxu0 %v1428_v0 }
 0x38c   :  { %1363 = vmatpush3.bf16.msra.mxu0 %v1513_v16 }
 0x38d   :  { %1364 = vmatprep.subr.bf16.mxu0 %v1428_v0 }
 0x390   :  { %1366 = vmatpush3.bf16.msra.mxu0 %v1525_v19 }
 0x391   :  { %1367 = vmatprep.subr.bf16.mxu0 %v1428_v0 }
 0x394   :  { %1369 = vmatpush3.bf16.msra.mxu0 %v1537_v22 }
 0x395   :  { %1370 = vmatprep.subr.bf16.mxu0 %v1428_v0 }
 0x398   :  { %1372 = vmatpush3.bf16.msra.mxu0 %v1549_v25 }
 0x399   :  { %1397 = vmatprep.subr.bf16.mxu0 %v1428_v0 }
 0x44e   :  { %v400_v46 = vpop.f32.mrb[4].mxu0 }
 0x44f   :  { %v406_v47 = vmul.f32 %v734_v45, %v400_v46  ;;  %v1064_v48 = vpop.f32.mrb[5].mxu0 }
 0x451   :  { %1098 = vmatmul.mubr.f32.vlgmr.msra.gmra.mrb[4].mxu1 %v406_v47 }
 0x452   :  { %1375 = vmatpush3.bf16.msra.mxu1 %v1468_v5  ;;  %1167 = vmatprep.mubr.msk.f32.mxu1 %vm1429_vm0, %v1430_v4  ;;  %v633_v5 = vld [vmem:[%s1755_s3 + $0x50] sm:$0xff] }
 0x453   :  { %1376 = vmatprep.subr.bf16.mxu1 %v1428_v0 }
 0x456   :  { %1378 = vmatpush3.bf16.msra.mxu1 %v1477_v7  ;;  %v1413_v7 = vpack.c.bf16 %v634_v6, %v633_v5 }
 0x457   :  { %1379 = vmatprep.subr.bf16.mxu1 %v1428_v0 }
 0x45a   :  { %1381 = vmatpush3.bf16.msra.mxu1 %v1489_v10  ;;  %v1416_v10 = vpack.c.bf16 %v636_v9, %v635_v8 }
 0x45b   :  { %1382 = vmatprep.subr.bf16.mxu1 %v1428_v0 }
 0x45e   :  { %1384 = vmatpush3.bf16.msra.mxu1 %v1501_v13  ;;  %v1419_v13 = vpack.c.bf16 %v638_v12, %v637_v11 }
 0x45f   :  { %1385 = vmatprep.subr.bf16.mxu1 %v1428_v0 }
 0x462   :  { %1387 = vmatpush3.bf16.msra.mxu1 %v1513_v16 }
 0x463   :  { %1388 = vmatprep.subr.bf16.mxu1 %v1428_v0 }
 0x466   :  { %1390 = vmatpush3.bf16.msra.mxu1 %v1525_v19 }
 0x467   :  { %1391 = vmatprep.subr.bf16.mxu1 %v1428_v0 }
 0x46a   :  { %1393 = vmatpush3.bf16.msra.mxu1 %v1537_v22 }
 0x46b   :  { %1394 = vmatprep.subr.bf16.mxu1 %v1428_v0 }
 0x46e   :  { %1396 = vmatpush3.bf16.msra.mxu1 %v1549_v25 }
 0x524   :  { %v473_v50 = vpop.f32.mrb[4].mxu1 }
 0x525   :  { %v479_v51 = vmul.f32 %v735_v49, %v473_v50  ;;  %v1099_v52 = vpop.f32.mrb[5].mxu1 }
 0x527   :  { %1133 = vmatmul.mubr.f32.vlgmr.msra.gmra.mrb[6].mxu0 %v479_v51 }
 0x528   :  { %1202 = vmatprep.mubr.msk.f32.mxu0 %vm1429_vm0, %v1430_v4  ;;  %1399 = vmatpush3.bf16.msra.mxu0 %v1398_v56  ;;  %v1410_v4 = vpack.c.bf16 %v632_v3, %v631_v2 }
 0x529   :  { %1400 = vmatprep.subr.bf16.mxu0 %v1428_v0 }
 0x52c   :  { %1402 = vmatpush3.bf16.msra.mxu0 %v1401_v58 }
 0x52d   :  { %1403 = vmatprep.subr.bf16.mxu0 %v1428_v0 }
 0x530   :  { %1405 = vmatpush3.bf16.msra.mxu0 %v1404_v61 }
 0x531   :  { %1406 = vmatprep.subr.bf16.mxu0 %v1428_v0 }
 0x534   :  { %1408 = vmatpush3.bf16.msra.mxu0 %v1407_v1 }
 0x535   :  { %1409 = vmatprep.subr.bf16.mxu0 %v1428_v0 }
 0x538   :  { %1411 = vmatpush3.bf16.msra.mxu0 %v1410_v4 }
 0x539   :  { %1412 = vmatprep.subr.bf16.mxu0 %v1428_v0 }
 0x53c   :  { %1414 = vmatpush3.bf16.msra.mxu0 %v1413_v7 }
 0x53d   :  { %1415 = vmatprep.subr.bf16.mxu0 %v1428_v0 }
 0x540   :  { %1417 = vmatpush3.bf16.msra.mxu0 %v1416_v10 }
 0x541   :  { %1418 = vmatprep.subr.bf16.mxu0 %v1428_v0 }
 0x544   :  { %1420 = vmatpush3.bf16.msra.mxu0 %v1419_v13 }
 0x5fa   :  { %v546_v15 = vpop.f32.mrb[6].mxu0 }
 0x5fb   :  { %v552_v16 = vmul.f32 %v736_v14, %v546_v15  ;;  %v1134_v17 = vpop.f32.mrb[7].mxu0 }
 0x5fd   :  { %1168 = vmatmul.mubr.f32.vlgmr.msra.gmra.mrb[6].mxu1 %v552_v16 }
 0x6d0   :  { %v619_v18 = vpop.f32.mrb[6].mxu1 }
 0x6d1   :  { %v1169_v19 = vpop.f32.mrb[7].mxu1  ;;  %1203 = vmatmul.mubr.f32.vlgmr.msra.gmra.mrb[8].mxu0 %v619_v18 }
 0x7a4   :  { %v705_v22 = vpop.f32.mrb[8].mxu0 }
 0x7a5   :  { %v1204_v23 = vpop.f32.mrb[9].mxu0  ;;  %v712_v24 = vsel %vm711_vm1, %v705_v22, -1e+30 }
 0x7a6   :  { %713 = vmax.xlane.f32.xlu0 %v712_v24 }
 0x833   :  { %v714_v0 = vpop.xlane.xlu0 %713 }
 0x834   :  { %v715_v25 = vsub.f32 %v712_v24, %v714_v0 }
 0x836   :  { %v716_v26 = vmul.f32 1.442695, %v715_v25 }
 0x838   :  { %1424 = vpow2.f32 %v716_v26 }
 0x842   :  { %v1425_v27 = vpop.eup %1424 }
 0x843   :  { %v718_v28 = vsel %vm711_vm1, %v1425_v27, 0.0 }
 0x844   :  { %719 = vadd.xlane.f32.xlu0 %v718_v28 }
 0x8d1   :  { %v720_v29 = vpop.xlane.xlu0 %719 }
 0x8d2   :  { %1426 = vlog2.f32 %v720_v29 }
 0x8dc   :  { %v1427_v30 = vpop.eup %1426 }
 0x8dd   :  { %v722_v31 = vmul.f32 0.6931472, %v1427_v30 }
 0x8df   :  { %v723_v32 = vsub.f32 %v715_v25, %v722_v31 }
 0x8e1   :  { %724 = vst [vmem:[%s1756_s4] sm:$0xff] %v723_v32 }

</bundles_post_ra>
